<compile_context>
chip_gen: v6e
topology: v6e:2x2x1
jax: 0.10.0
libtpu: 0.0.40
codegen_flags: <defaults>
</compile_context>

<pallas_src>
import math
import functools

import jax
import jax.numpy as jnp
from jax.experimental import pallas as pl
from jax.experimental.pallas import tpu as pltpu


# ---------------------------------------------------------------- config ----
class Config:
    n_embd = 32       # C
    n_head = 4        # H
    d_latent = 8
    dropout = 0.0
    bias = False
    block_size = 16   # max seq len for rope cache


# ------------------------------------------------------------- rope cache ---
def precompute_rope_cache(dim, max_seq_len, theta=10000.0):
    inv_freq = 1.0 / (theta ** (jnp.arange(0, dim, 2, dtype=jnp.float32) / dim))
    t = jnp.arange(max_seq_len, dtype=jnp.float32)
    freqs = jnp.einsum("i,j->ij", t, inv_freq)          # (T_max, dim//2)
    emb = jnp.concatenate([freqs, freqs], axis=-1)      # (T_max, dim)
    return jnp.cos(emb), jnp.sin(emb)


def apply_rope_ref(x, cos, sin):
    # Pure-JAX reference only; mirrors the PyTorch apply_rope exactly.
    B, H, T, C = x.shape
    c = cos[:T][None, None].astype(jnp.float32)
    s = sin[:T][None, None].astype(jnp.float32)
    xf = x.astype(jnp.float32)
    xr = xf.reshape(B, H, T, C // 2, 2)
    x1, x2 = xr[..., 0], xr[..., 1]
    rot = jnp.stack([-x2, x1], axis=-1).reshape(B, H, T, C)
    return (xf * c + rot * s).astype(x.dtype)


# --------------------------------------------------------------- params -----
def init_params(key, cfg):
    H, C, dl = cfg.n_head, cfg.n_embd, cfg.d_latent
    dh = C // H
    dhe = dh // 2
    dhc = dh // 2
    shapes = {
        "q_down": (C, H * dl),
        "k_down": (C, H * dl),
        "v_down": (C, H * dl),
        "q_up_c": (dl, dhc),
        "q_up_e": (dl, dhe),
        "k_up_c": (dl, dhc),
        "k_up_e": (dl, dhe),
        "v_up": (dl, dh),
        "c_proj": (C, C),
    }
    params = {}
    names = sorted(shapes)
    keys = jax.random.split(key, len(names))
    for k_, name in zip(keys, names):
        shp = shapes[name]
        bound = 1.0 / math.sqrt(shp[0])  # PyTorch Linear default init range
        params[name] = jax.random.uniform(k_, shp, jnp.float32, -bound, bound)
    params["rope_cache"] = precompute_rope_cache(dhe, cfg.block_size)
    return params


# ------------------------------------------------- offline weight merging ---
def _rotate_pair_columns(w):
    """rot[:, 2i] = -w[:, 2i+1]; rot[:, 2i+1] = w[:, 2i]  (RoPE pair rotation
    pushed onto the weight columns so the kernel needs no lane shuffles)."""
    dl, de = w.shape
    w2 = w.reshape(dl, de // 2, 2)
    w1, w2_ = w2[..., 0], w2[..., 1]
    return jnp.stack([-w2_, w1], axis=-1).reshape(dl, de)


def build_merged_weights(params, cfg):
    """Absorb (down @ up) per head and concatenate everything into one matrix.

    Column layout of W_big (width = 5*C + 2*H*dl):
      [0,   C) : q = [q_c | q_e]          per head
      [C,  2C) : q_rot = [0 | rot(q_e)]   per head
      [2C, 3C) : k = [k_c | k_e]
      [3C, 4C) : k_rot = [0 | rot(k_e)]
      [4C, 5C) : v
      [5C, 5C +   H*dl) : k_latent  (present_kv)
      [5C + H*dl, end ) : v_latent  (present_kv)
    """
    H, C, dl = cfg.n_head, cfg.n_embd, cfg.d_latent
    dh = C // H
    dhc = dh // 2
    dhe = dh // 2

    w_q_up = jnp.concatenate([params["q_up_c"], params["q_up_e"]], axis=1)   # (dl, dh)
    w_k_up = jnp.concatenate([params["k_up_c"], params["k_up_e"]], axis=1)   # (dl, dh)
    w_v_up = params["v_up"]                                                  # (dl, dh)
    zeros_c = jnp.zeros((dl, dhc), jnp.float32)
    w_q_up_rot = jnp.concatenate([zeros_c, _rotate_pair_columns(params["q_up_e"])], axis=1)
    w_k_up_rot = jnp.concatenate([zeros_c, _rotate_pair_columns(params["k_up_e"])], axis=1)

    def absorb(w_down, w_up):
        # (C, H*dl) x (dl, n) -> (C, H*n), per-head block-diagonal absorption.
        wd = w_down.reshape(C, H, dl)
        return jnp.einsum("chl,ln->chn", wd, w_up).reshape(C, H * w_up.shape[1])

    w_big = jnp.concatenate(
        [
            absorb(params["q_down"], w_q_up),
            absorb(params["q_down"], w_q_up_rot),
            absorb(params["k_down"], w_k_up),
            absorb(params["k_down"], w_k_up_rot),
            absorb(params["v_down"], w_v_up),
            params["k_down"],
            params["v_down"],
        ],
        axis=1,
    )
    return w_big, dhc, dhe


# --------------------------------------------------------- fused kernel -----
def _mla_fused_kernel(x_ref, wbig_ref, cos_ref, sin_ref, wcp_ref,
                      y_ref, klat_ref, vlat_ref, y_sc,
                      *, B, T, H, dh, dl, scale):
    C = H * dh
    Hdl = H * dl

    # One MXU matmul for ALL projections (q/k incl. rotated RoPE halves, v,
    # and the latent k/v for present_kv):  (B*T, C) @ (C, 5C + 2*H*dl)
    x = x_ref[...]                                           # (BT, C) f32
    big = jnp.dot(x, wbig_ref[...], preferred_element_type=jnp.float32)

    # RoPE as pure element-wise combine (rotation is in the weight columns).
    cs = cos_ref[...]                                        # (BT, C)
    sn = sin_ref[...]                                        # (BT, C)
    q_all = big[:, 0 * C:1 * C] * cs + big[:, 1 * C:2 * C] * sn   # (BT, C)
    k_all = big[:, 2 * C:3 * C] * cs + big[:, 3 * C:4 * C] * sn   # (BT, C)
    v_all = big[:, 4 * C:5 * C]                                   # (BT, C)

    # present_kv (pre-RoPE latents), written straight from the merged matmul.
    klat_ref[...] = big[:, 5 * C:5 * C + Hdl].astype(klat_ref.dtype)
    vlat_ref[...] = big[:, 5 * C + Hdl:5 * C + 2 * Hdl].astype(vlat_ref.dtype)

    # Causal mask built once.
    row = jax.lax.broadcasted_iota(jnp.int32, (T, T), 0)
    col = jax.lax.broadcasted_iota(jnp.int32, (T, T), 1)
    causal = col <= row

    # Causal attention for every (batch, head) slice; results are written
    # head-concatenated into the lane-dense (B*T, C) scratch (this layout IS
    # y.transpose(1,2).reshape(B,T,C), so no transposes are needed).
    for b in range(B):
        r0 = b * T
        for h in range(H):
            c0 = h * dh
            qb = q_all[r0:r0 + T, c0:c0 + dh]                # (T, dh)
            kb = k_all[r0:r0 + T, c0:c0 + dh]
            vb = v_all[r0:r0 + T, c0:c0 + dh]

            s = jax.lax.dot_general(
                qb, kb, (((1,), (1,)), ((), ())),
                preferred_element_type=jnp.float32) * scale   # (T, T)
            s = jnp.where(causal, s, -1e30)
            s = s - jnp.max(s, axis=-1, keepdims=True)
            p = jnp.exp(s)
            p = p * pl.reciprocal(jnp.sum(p, axis=-1, keepdims=True), approx=True)

            y_sc[r0:r0 + T, c0:c0 + dh] = jnp.dot(
                p, vb, preferred_element_type=jnp.float32)

    # Output projection, still inside the fused kernel.
    y_ref[...] = jnp.dot(y_sc[...], wcp_ref[...],
                         preferred_element_type=jnp.float32).astype(y_ref.dtype)


# --------------------------------------------------------------- forward ----
def mla_forward(params, x, cfg):
    B, T, C = x.shape
    H, dl = cfg.n_head, cfg.d_latent
    dh = C // H

    w_big, dhc, dhe = build_merged_weights(params, cfg)
    n_big = w_big.shape[1]

    # Per-(t, head-column) cos/sin masks: 1/0 on the "content" half, rope
    # cos/sin on the "embedding" half; broadcast across batch and heads.
    cos_e, sin_e = params["rope_cache"]                      # (T_max, dhe)
    cos_h = jnp.concatenate([jnp.ones((T, dhc), jnp.float32), cos_e[:T]], axis=1)
    sin_h = jnp.concatenate([jnp.zeros((T, dhc), jnp.float32), sin_e[:T]], axis=1)
    cos_bt = jnp.tile(cos_h, (B, H))                         # (B*T, C)
    sin_bt = jnp.tile(sin_h, (B, H))

    x2d = x.reshape(B * T, C)
    kern = functools.partial(
        _mla_fused_kernel, B=B, T=T, H=H, dh=dh, dl=dl, scale=1.0 / math.sqrt(dh))

    y2d, klat2d, vlat2d = pl.pallas_call(
        kern,
        out_shape=(
            jax.ShapeDtypeStruct((B * T, C), x.dtype),
            jax.ShapeDtypeStruct((B * T, H * dl), x.dtype),
            jax.ShapeDtypeStruct((B * T, H * dl), x.dtype),
        ),
        grid=(1,),
        in_specs=[
            pl.BlockSpec((B * T, C), lambda i: (0, 0)),       # x
            pl.BlockSpec((C, n_big), lambda i: (0, 0)),       # merged weights
            pl.BlockSpec((B * T, C), lambda i: (0, 0)),       # cos
            pl.BlockSpec((B * T, C), lambda i: (0, 0)),       # sin
            pl.BlockSpec((C, C), lambda i: (0, 0)),           # c_proj
        ],
        out_specs=(
            pl.BlockSpec((B * T, C), lambda i: (0, 0)),
            pl.BlockSpec((B * T, H * dl), lambda i: (0, 0)),
            pl.BlockSpec((B * T, H * dl), lambda i: (0, 0)),
        ),
        scratch_shapes=[pltpu.VMEM((B * T, C), jnp.float32)],
        compiler_params=pltpu.CompilerParams(dimension_semantics=("arbitrary",)),
    )(x2d, w_big, cos_bt, sin_bt, params["c_proj"])

    y = y2d.reshape(B, T, C)
    present_kv = (klat2d.reshape(B, T, H, dl), vlat2d.reshape(B, T, H, dl))
    return y, present_kv


# --------------------------------------------------------- pure-JAX ref -----
def mla_forward_ref(params, x, cfg):
    B, T, C = x.shape
    H, dl = cfg.n_head, cfg.d_latent
    dh = C // H

    q_lat = (x @ params["q_down"]).reshape(B, T, H, dl)
    k_lat = (x @ params["k_down"]).reshape(B, T, H, dl)
    v_lat = (x @ params["v_down"]).reshape(B, T, H, dl)

    def up(lat, w):
        return (lat @ w).transpose(0, 2, 1, 3)

    q_c = up(q_lat, params["q_up_c"])
    q_e = up(q_lat, params["q_up_e"])
    k_c = up(k_lat, params["k_up_c"])
    k_e = up(k_lat, params["k_up_e"])
    v = up(v_lat, params["v_up"])

    cos, sin = params["rope_cache"]
    q = jnp.concatenate([q_c, apply_rope_ref(q_e, cos, sin)], axis=-1)
    k = jnp.concatenate([k_c, apply_rope_ref(k_e, cos, sin)], axis=-1)

    att = jnp.einsum("bhqd,bhkd->bhqk", q, k) / math.sqrt(dh)
    mask = jnp.tril(jnp.ones((T, T), dtype=bool))
    att = jnp.where(mask[None, None], att, -jnp.inf)
    att = jax.nn.softmax(att, axis=-1)
    y = jnp.einsum("bhqk,bhkd->bhqd", att, v)
    y = y.transpose(0, 2, 1, 3).reshape(B, T, C)
    y = y @ params["c_proj"]
    return y, (k_lat, v_lat)


# ------------------------------------------------------------------ main ----
if __name__ == "__main__":
    cfg = Config()
    key = jax.random.PRNGKey(0)
    k_param, k_x = jax.random.split(key)

    params = init_params(k_param, cfg)
    B, T = 2, 8
    x = jax.random.normal(k_x, (B, T, cfg.n_embd), dtype=jnp.float32)

    y, (k_lat, v_lat) = mla_forward(params, x, cfg)
    y = jax.block_until_ready(y)

    y_ref, (k_lat_ref, v_lat_ref) = mla_forward_ref(params, x, cfg)

    assert y.shape == (B, T, cfg.n_embd)
    assert k_lat.shape == (B, T, cfg.n_head, cfg.d_latent)
    assert v_lat.shape == (B, T, cfg.n_head, cfg.d_latent)
    # y tolerance is 2e-3 to cover the approx (EUP) reciprocal in the softmax
    # and the (down @ up) weight-absorption reassociation; latents are exact
    # up to f32 matmul noise.
    assert jnp.allclose(y, y_ref, atol=2e-3, rtol=2e-3), "output mismatch vs reference"
    assert jnp.allclose(k_lat, k_lat_ref, atol=1e-4, rtol=1e-4)
    assert jnp.allclose(v_lat, v_lat_ref, atol=1e-4, rtol=1e-4)

    print("KERNEL_OK")
</pallas_src>

<mosaic_0001>
module attributes {stable_mosaic.version = 11 : i64} {
  func.func @_mla_fused_kernel(%arg0: i32, %arg1: memref<16x32xf32, #tpu.memory_space<vmem>>, %arg2: memref<32x224xf32, #tpu.memory_space<vmem>>, %arg3: memref<16x32xf32, #tpu.memory_space<vmem>>, %arg4: memref<16x32xf32, #tpu.memory_space<vmem>>, %arg5: memref<32x32xf32, #tpu.memory_space<vmem>>, %arg6: memref<16x32xf32, #tpu.memory_space<vmem>>, %arg7: memref<16x32xf32, #tpu.memory_space<vmem>>, %arg8: memref<16x32xf32, #tpu.memory_space<vmem>>, %arg9: memref<16x32xf32, #tpu.memory_space<vmem>>) attributes {dimension_semantics = [#tpu.dimension_semantics<arbitrary>], iteration_bounds = array<i64: 1>, scalar_prefetch = 0 : i64, scratch_operands = 1 : i64, tpu.core_type = #tpu.core_type<tc>, window_params = [{pipeline_mode = #tpu.pipeline_mode<synchronous>, transform_indices = @transform_0, window_bounds = array<i64: 16, 32>}, {pipeline_mode = #tpu.pipeline_mode<synchronous>, transform_indices = @transform_1, window_bounds = array<i64: 32, 224>}, {pipeline_mode = #tpu.pipeline_mode<synchronous>, transform_indices = @transform_2, window_bounds = array<i64: 16, 32>}, {pipeline_mode = #tpu.pipeline_mode<synchronous>, transform_indices = @transform_3, window_bounds = array<i64: 16, 32>}, {pipeline_mode = #tpu.pipeline_mode<synchronous>, transform_indices = @transform_4, window_bounds = array<i64: 32, 32>}, {pipeline_mode = #tpu.pipeline_mode<synchronous>, transform_indices = @transform_5, window_bounds = array<i64: 16, 32>}, {pipeline_mode = #tpu.pipeline_mode<synchronous>, transform_indices = @transform_6, window_bounds = array<i64: 16, 32>}, {pipeline_mode = #tpu.pipeline_mode<synchronous>, transform_indices = @transform_7, window_bounds = array<i64: 16, 32>}]} {
    %c0 = arith.constant 0 : index
    %c0_0 = arith.constant 0 : index
    %0 = vector.load %arg1[%c0, %c0_0] : memref<16x32xf32, #tpu.memory_space<vmem>>, vector<16x32xf32>
    %c0_1 = arith.constant 0 : index
    %c0_2 = arith.constant 0 : index
    %1 = vector.load %arg2[%c0_1, %c0_2] : memref<32x224xf32, #tpu.memory_space<vmem>>, vector<32x224xf32>
    %cst = arith.constant dense<0.000000e+00> : vector<16x224xf32>
    %2 = tpu.matmul %0, %1, %cst {dimension_numbers = #tpu.dot_dimension_numbers<[1], [0], [0], [1], [0, 0, 1, 1], [], []>} : vector<16x32xf32>, vector<32x224xf32>, vector<16x224xf32> -> vector<16x224xf32>
    %c0_3 = arith.constant 0 : index
    %c0_4 = arith.constant 0 : index
    %3 = vector.load %arg3[%c0_3, %c0_4] : memref<16x32xf32, #tpu.memory_space<vmem>>, vector<16x32xf32>
    %c0_5 = arith.constant 0 : index
    %c0_6 = arith.constant 0 : index
    %4 = vector.load %arg4[%c0_5, %c0_6] : memref<16x32xf32, #tpu.memory_space<vmem>>, vector<16x32xf32>
    %5 = vector.extract_strided_slice %2 {offsets = [0, 0], sizes = [16, 32], strides = [1, 1]} : vector<16x224xf32> to vector<16x32xf32>
    %6 = arith.mulf %5, %3 : vector<16x32xf32>
    %7 = vector.extract_strided_slice %2 {offsets = [0, 32], sizes = [16, 32], strides = [1, 1]} : vector<16x224xf32> to vector<16x32xf32>
    %8 = arith.mulf %7, %4 : vector<16x32xf32>
    %9 = arith.addf %6, %8 : vector<16x32xf32>
    %10 = vector.extract_strided_slice %2 {offsets = [0, 64], sizes = [16, 32], strides = [1, 1]} : vector<16x224xf32> to vector<16x32xf32>
    %11 = arith.mulf %10, %3 : vector<16x32xf32>
    %12 = vector.extract_strided_slice %2 {offsets = [0, 96], sizes = [16, 32], strides = [1, 1]} : vector<16x224xf32> to vector<16x32xf32>
    %13 = arith.mulf %12, %4 : vector<16x32xf32>
    %14 = arith.addf %11, %13 : vector<16x32xf32>
    %15 = vector.extract_strided_slice %2 {offsets = [0, 128], sizes = [16, 32], strides = [1, 1]} : vector<16x224xf32> to vector<16x32xf32>
    %16 = vector.extract_strided_slice %2 {offsets = [0, 160], sizes = [16, 32], strides = [1, 1]} : vector<16x224xf32> to vector<16x32xf32>
    %c0_7 = arith.constant 0 : index
    %c0_8 = arith.constant 0 : index
    %17 = vector.load %arg7[%c0_7, %c0_8] : memref<16x32xf32, #tpu.memory_space<vmem>>, vector<16x32xf32>
    tpu.vector_store %arg7[%c0_7, %c0_8], %16 {strides = array<i32>} : memref<16x32xf32, #tpu.memory_space<vmem>>, vector<16x32xf32>,
    %18 = vector.extract_strided_slice %2 {offsets = [0, 192], sizes = [16, 32], strides = [1, 1]} : vector<16x224xf32> to vector<16x32xf32>
    %c0_9 = arith.constant 0 : index
    %c0_10 = arith.constant 0 : index
    %19 = vector.load %arg8[%c0_9, %c0_10] : memref<16x32xf32, #tpu.memory_space<vmem>>, vector<16x32xf32>
    tpu.vector_store %arg8[%c0_9, %c0_10], %18 {strides = array<i32>} : memref<16x32xf32, #tpu.memory_space<vmem>>, vector<16x32xf32>,
    %20 = tpu.iota {dimensions = array<i32: 0>} : vector<8x8xi32>
    %21 = tpu.iota {dimensions = array<i32: 1>} : vector<8x8xi32>
    %22 = arith.cmpi sle, %21, %20 : vector<8x8xi32>
    %23 = vector.extract_strided_slice %9 {offsets = [0, 0], sizes = [8, 8], strides = [1, 1]} : vector<16x32xf32> to vector<8x8xf32>
    %24 = vector.extract_strided_slice %14 {offsets = [0, 0], sizes = [8, 8], strides = [1, 1]} : vector<16x32xf32> to vector<8x8xf32>
    %25 = vector.extract_strided_slice %15 {offsets = [0, 0], sizes = [8, 8], strides = [1, 1]} : vector<16x32xf32> to vector<8x8xf32>
    %cst_11 = arith.constant dense<0.000000e+00> : vector<8x8xf32>
    %26 = tpu.matmul %23, %24, %cst_11 {dimension_numbers = #tpu.dot_dimension_numbers<[1], [1], [0], [0], [0, 0, 1, 0], [], []>} : vector<8x8xf32>, vector<8x8xf32>, vector<8x8xf32> -> vector<8x8xf32>
    %cst_12 = arith.constant 0.353553385 : f32
    %27 = vector.broadcast %cst_12 : f32 to vector<8x8xf32>
    %28 = arith.mulf %26, %27 : vector<8x8xf32>
    %cst_13 = arith.constant -1.000000e+30 : f32
    %29 = vector.broadcast %cst_13 : f32 to vector<8x8xf32>
    %30 = arith.select %22, %28, %29 : vector<8x8xi1>, vector<8x8xf32>
    %cst_14 = arith.constant dense<0xFF800000> : vector<8xf32>
    %31 = vector.multi_reduction <maximumf>, %30, %cst_14 [1] : vector<8x8xf32> to vector<8xf32>
    %32 = vector.shape_cast %31 : vector<8xf32> to vector<8x1xf32>
    %33 = vector.broadcast %32 : vector<8x1xf32> to vector<8x8xf32>
    %34 = arith.subf %30, %33 : vector<8x8xf32>
    %35 = math.exp %34 : vector<8x8xf32>
    %cst_15 = arith.constant dense<0.000000e+00> : vector<8xf32>
    %36 = vector.multi_reduction <add>, %35, %cst_15 [1] : vector<8x8xf32> to vector<8xf32>
    %37 = vector.shape_cast %36 : vector<8xf32> to vector<8x1xf32>
    %38 = tpu.reciprocal %37 {approx = true} : vector<8x1xf32> -> vector<8x1xf32>
    %39 = vector.broadcast %38 : vector<8x1xf32> to vector<8x8xf32>
    %40 = arith.mulf %35, %39 : vector<8x8xf32>
    %cst_16 = arith.constant dense<0.000000e+00> : vector<8x8xf32>
    %41 = tpu.matmul %40, %25, %cst_16 {dimension_numbers = #tpu.dot_dimension_numbers<[1], [0], [0], [1], [0, 0, 1, 1], [], []>} : vector<8x8xf32>, vector<8x8xf32>, vector<8x8xf32> -> vector<8x8xf32>
    %c0_17 = arith.constant 0 : index
    %c0_18 = arith.constant 0 : index
    %42 = vector.load %arg9[%c0_17, %c0_18] : memref<16x32xf32, #tpu.memory_space<vmem>>, vector<8x8xf32>
    tpu.vector_store %arg9[%c0_17, %c0_18], %41 {strides = array<i32>} : memref<16x32xf32, #tpu.memory_space<vmem>>, vector<8x8xf32>,
    %43 = vector.extract_strided_slice %9 {offsets = [0, 8], sizes = [8, 8], strides = [1, 1]} : vector<16x32xf32> to vector<8x8xf32>
    %44 = vector.extract_strided_slice %14 {offsets = [0, 8], sizes = [8, 8], strides = [1, 1]} : vector<16x32xf32> to vector<8x8xf32>
    %45 = vector.extract_strided_slice %15 {offsets = [0, 8], sizes = [8, 8], strides = [1, 1]} : vector<16x32xf32> to vector<8x8xf32>
    %cst_19 = arith.constant dense<0.000000e+00> : vector<8x8xf32>
    %46 = tpu.matmul %43, %44, %cst_19 {dimension_numbers = #tpu.dot_dimension_numbers<[1], [1], [0], [0], [0, 0, 1, 0], [], []>} : vector<8x8xf32>, vector<8x8xf32>, vector<8x8xf32> -> vector<8x8xf32>
    %cst_20 = arith.constant 0.353553385 : f32
    %47 = vector.broadcast %cst_20 : f32 to vector<8x8xf32>
    %48 = arith.mulf %46, %47 : vector<8x8xf32>
    %cst_21 = arith.constant -1.000000e+30 : f32
    %49 = vector.broadcast %cst_21 : f32 to vector<8x8xf32>
    %50 = arith.select %22, %48, %49 : vector<8x8xi1>, vector<8x8xf32>
    %cst_22 = arith.constant dense<0xFF800000> : vector<8xf32>
    %51 = vector.multi_reduction <maximumf>, %50, %cst_22 [1] : vector<8x8xf32> to vector<8xf32>
    %52 = vector.shape_cast %51 : vector<8xf32> to vector<8x1xf32>
    %53 = vector.broadcast %52 : vector<8x1xf32> to vector<8x8xf32>
    %54 = arith.subf %50, %53 : vector<8x8xf32>
    %55 = math.exp %54 : vector<8x8xf32>
    %cst_23 = arith.constant dense<0.000000e+00> : vector<8xf32>
    %56 = vector.multi_reduction <add>, %55, %cst_23 [1] : vector<8x8xf32> to vector<8xf32>
    %57 = vector.shape_cast %56 : vector<8xf32> to vector<8x1xf32>
    %58 = tpu.reciprocal %57 {approx = true} : vector<8x1xf32> -> vector<8x1xf32>
    %59 = vector.broadcast %58 : vector<8x1xf32> to vector<8x8xf32>
    %60 = arith.mulf %55, %59 : vector<8x8xf32>
    %cst_24 = arith.constant dense<0.000000e+00> : vector<8x8xf32>
    %61 = tpu.matmul %60, %45, %cst_24 {dimension_numbers = #tpu.dot_dimension_numbers<[1], [0], [0], [1], [0, 0, 1, 1], [], []>} : vector<8x8xf32>, vector<8x8xf32>, vector<8x8xf32> -> vector<8x8xf32>
    %c0_25 = arith.constant 0 : index
    %c8 = arith.constant 8 : index
    %62 = vector.load %arg9[%c0_25, %c8] : memref<16x32xf32, #tpu.memory_space<vmem>>, vector<8x8xf32>
    tpu.vector_store %arg9[%c0_25, %c8], %61 {strides = array<i32>} : memref<16x32xf32, #tpu.memory_space<vmem>>, vector<8x8xf32>,
    %63 = vector.extract_strided_slice %9 {offsets = [0, 16], sizes = [8, 8], strides = [1, 1]} : vector<16x32xf32> to vector<8x8xf32>
    %64 = vector.extract_strided_slice %14 {offsets = [0, 16], sizes = [8, 8], strides = [1, 1]} : vector<16x32xf32> to vector<8x8xf32>
    %65 = vector.extract_strided_slice %15 {offsets = [0, 16], sizes = [8, 8], strides = [1, 1]} : vector<16x32xf32> to vector<8x8xf32>
    %cst_26 = arith.constant dense<0.000000e+00> : vector<8x8xf32>
    %66 = tpu.matmul %63, %64, %cst_26 {dimension_numbers = #tpu.dot_dimension_numbers<[1], [1], [0], [0], [0, 0, 1, 0], [], []>} : vector<8x8xf32>, vector<8x8xf32>, vector<8x8xf32> -> vector<8x8xf32>
    %cst_27 = arith.constant 0.353553385 : f32
    %67 = vector.broadcast %cst_27 : f32 to vector<8x8xf32>
    %68 = arith.mulf %66, %67 : vector<8x8xf32>
    %cst_28 = arith.constant -1.000000e+30 : f32
    %69 = vector.broadcast %cst_28 : f32 to vector<8x8xf32>
    %70 = arith.select %22, %68, %69 : vector<8x8xi1>, vector<8x8xf32>
    %cst_29 = arith.constant dense<0xFF800000> : vector<8xf32>
    %71 = vector.multi_reduction <maximumf>, %70, %cst_29 [1] : vector<8x8xf32> to vector<8xf32>
    %72 = vector.shape_cast %71 : vector<8xf32> to vector<8x1xf32>
    %73 = vector.broadcast %72 : vector<8x1xf32> to vector<8x8xf32>
    %74 = arith.subf %70, %73 : vector<8x8xf32>
    %75 = math.exp %74 : vector<8x8xf32>
    %cst_30 = arith.constant dense<0.000000e+00> : vector<8xf32>
    %76 = vector.multi_reduction <add>, %75, %cst_30 [1] : vector<8x8xf32> to vector<8xf32>
    %77 = vector.shape_cast %76 : vector<8xf32> to vector<8x1xf32>
    %78 = tpu.reciprocal %77 {approx = true} : vector<8x1xf32> -> vector<8x1xf32>
    %79 = vector.broadcast %78 : vector<8x1xf32> to vector<8x8xf32>
    %80 = arith.mulf %75, %79 : vector<8x8xf32>
    %cst_31 = arith.constant dense<0.000000e+00> : vector<8x8xf32>
    %81 = tpu.matmul %80, %65, %cst_31 {dimension_numbers = #tpu.dot_dimension_numbers<[1], [0], [0], [1], [0, 0, 1, 1], [], []>} : vector<8x8xf32>, vector<8x8xf32>, vector<8x8xf32> -> vector<8x8xf32>
    %c0_32 = arith.constant 0 : index
    %c16 = arith.constant 16 : index
    %82 = vector.load %arg9[%c0_32, %c16] : memref<16x32xf32, #tpu.memory_space<vmem>>, vector<8x8xf32>
    tpu.vector_store %arg9[%c0_32, %c16], %81 {strides = array<i32>} : memref<16x32xf32, #tpu.memory_space<vmem>>, vector<8x8xf32>,
    %83 = vector.extract_strided_slice %9 {offsets = [0, 24], sizes = [8, 8], strides = [1, 1]} : vector<16x32xf32> to vector<8x8xf32>
    %84 = vector.extract_strided_slice %14 {offsets = [0, 24], sizes = [8, 8], strides = [1, 1]} : vector<16x32xf32> to vector<8x8xf32>
    %85 = vector.extract_strided_slice %15 {offsets = [0, 24], sizes = [8, 8], strides = [1, 1]} : vector<16x32xf32> to vector<8x8xf32>
    %cst_33 = arith.constant dense<0.000000e+00> : vector<8x8xf32>
    %86 = tpu.matmul %83, %84, %cst_33 {dimension_numbers = #tpu.dot_dimension_numbers<[1], [1], [0], [0], [0, 0, 1, 0], [], []>} : vector<8x8xf32>, vector<8x8xf32>, vector<8x8xf32> -> vector<8x8xf32>
    %cst_34 = arith.constant 0.353553385 : f32
    %87 = vector.broadcast %cst_34 : f32 to vector<8x8xf32>
    %88 = arith.mulf %86, %87 : vector<8x8xf32>
    %cst_35 = arith.constant -1.000000e+30 : f32
    %89 = vector.broadcast %cst_35 : f32 to vector<8x8xf32>
    %90 = arith.select %22, %88, %89 : vector<8x8xi1>, vector<8x8xf32>
    %cst_36 = arith.constant dense<0xFF800000> : vector<8xf32>
    %91 = vector.multi_reduction <maximumf>, %90, %cst_36 [1] : vector<8x8xf32> to vector<8xf32>
    %92 = vector.shape_cast %91 : vector<8xf32> to vector<8x1xf32>
    %93 = vector.broadcast %92 : vector<8x1xf32> to vector<8x8xf32>
    %94 = arith.subf %90, %93 : vector<8x8xf32>
    %95 = math.exp %94 : vector<8x8xf32>
    %cst_37 = arith.constant dense<0.000000e+00> : vector<8xf32>
    %96 = vector.multi_reduction <add>, %95, %cst_37 [1] : vector<8x8xf32> to vector<8xf32>
    %97 = vector.shape_cast %96 : vector<8xf32> to vector<8x1xf32>
    %98 = tpu.reciprocal %97 {approx = true} : vector<8x1xf32> -> vector<8x1xf32>
    %99 = vector.broadcast %98 : vector<8x1xf32> to vector<8x8xf32>
    %100 = arith.mulf %95, %99 : vector<8x8xf32>
    %cst_38 = arith.constant dense<0.000000e+00> : vector<8x8xf32>
    %101 = tpu.matmul %100, %85, %cst_38 {dimension_numbers = #tpu.dot_dimension_numbers<[1], [0], [0], [1], [0, 0, 1, 1], [], []>} : vector<8x8xf32>, vector<8x8xf32>, vector<8x8xf32> -> vector<8x8xf32>
    %c0_39 = arith.constant 0 : index
    %c24 = arith.constant 24 : index
    %102 = vector.load %arg9[%c0_39, %c24] : memref<16x32xf32, #tpu.memory_space<vmem>>, vector<8x8xf32>
    tpu.vector_store %arg9[%c0_39, %c24], %101 {strides = array<i32>} : memref<16x32xf32, #tpu.memory_space<vmem>>, vector<8x8xf32>,
    %103 = vector.extract_strided_slice %9 {offsets = [8, 0], sizes = [8, 8], strides = [1, 1]} : vector<16x32xf32> to vector<8x8xf32>
    %104 = vector.extract_strided_slice %14 {offsets = [8, 0], sizes = [8, 8], strides = [1, 1]} : vector<16x32xf32> to vector<8x8xf32>
    %105 = vector.extract_strided_slice %15 {offsets = [8, 0], sizes = [8, 8], strides = [1, 1]} : vector<16x32xf32> to vector<8x8xf32>
    %cst_40 = arith.constant dense<0.000000e+00> : vector<8x8xf32>
    %106 = tpu.matmul %103, %104, %cst_40 {dimension_numbers = #tpu.dot_dimension_numbers<[1], [1], [0], [0], [0, 0, 1, 0], [], []>} : vector<8x8xf32>, vector<8x8xf32>, vector<8x8xf32> -> vector<8x8xf32>
    %cst_41 = arith.constant 0.353553385 : f32
    %107 = vector.broadcast %cst_41 : f32 to vector<8x8xf32>
    %108 = arith.mulf %106, %107 : vector<8x8xf32>
    %cst_42 = arith.constant -1.000000e+30 : f32
    %109 = vector.broadcast %cst_42 : f32 to vector<8x8xf32>
    %110 = arith.select %22, %108, %109 : vector<8x8xi1>, vector<8x8xf32>
    %cst_43 = arith.constant dense<0xFF800000> : vector<8xf32>
    %111 = vector.multi_reduction <maximumf>, %110, %cst_43 [1] : vector<8x8xf32> to vector<8xf32>
    %112 = vector.shape_cast %111 : vector<8xf32> to vector<8x1xf32>
    %113 = vector.broadcast %112 : vector<8x1xf32> to vector<8x8xf32>
    %114 = arith.subf %110, %113 : vector<8x8xf32>
    %115 = math.exp %114 : vector<8x8xf32>
    %cst_44 = arith.constant dense<0.000000e+00> : vector<8xf32>
    %116 = vector.multi_reduction <add>, %115, %cst_44 [1] : vector<8x8xf32> to vector<8xf32>
    %117 = vector.shape_cast %116 : vector<8xf32> to vector<8x1xf32>
    %118 = tpu.reciprocal %117 {approx = true} : vector<8x1xf32> -> vector<8x1xf32>
    %119 = vector.broadcast %118 : vector<8x1xf32> to vector<8x8xf32>
    %120 = arith.mulf %115, %119 : vector<8x8xf32>
    %cst_45 = arith.constant dense<0.000000e+00> : vector<8x8xf32>
    %121 = tpu.matmul %120, %105, %cst_45 {dimension_numbers = #tpu.dot_dimension_numbers<[1], [0], [0], [1], [0, 0, 1, 1], [], []>} : vector<8x8xf32>, vector<8x8xf32>, vector<8x8xf32> -> vector<8x8xf32>
    %c8_46 = arith.constant 8 : index
    %c0_47 = arith.constant 0 : index
    %122 = vector.load %arg9[%c8_46, %c0_47] : memref<16x32xf32, #tpu.memory_space<vmem>>, vector<8x8xf32>
    tpu.vector_store %arg9[%c8_46, %c0_47], %121 {strides = array<i32>} : memref<16x32xf32, #tpu.memory_space<vmem>>, vector<8x8xf32>,
    %123 = vector.extract_strided_slice %9 {offsets = [8, 8], sizes = [8, 8], strides = [1, 1]} : vector<16x32xf32> to vector<8x8xf32>
    %124 = vector.extract_strided_slice %14 {offsets = [8, 8], sizes = [8, 8], strides = [1, 1]} : vector<16x32xf32> to vector<8x8xf32>
    %125 = vector.extract_strided_slice %15 {offsets = [8, 8], sizes = [8, 8], strides = [1, 1]} : vector<16x32xf32> to vector<8x8xf32>
    %cst_48 = arith.constant dense<0.000000e+00> : vector<8x8xf32>
    %126 = tpu.matmul %123, %124, %cst_48 {dimension_numbers = #tpu.dot_dimension_numbers<[1], [1], [0], [0], [0, 0, 1, 0], [], []>} : vector<8x8xf32>, vector<8x8xf32>, vector<8x8xf32> -> vector<8x8xf32>
    %cst_49 = arith.constant 0.353553385 : f32
    %127 = vector.broadcast %cst_49 : f32 to vector<8x8xf32>
    %128 = arith.mulf %126, %127 : vector<8x8xf32>
    %cst_50 = arith.constant -1.000000e+30 : f32
    %129 = vector.broadcast %cst_50 : f32 to vector<8x8xf32>
    %130 = arith.select %22, %128, %129 : vector<8x8xi1>, vector<8x8xf32>
    %cst_51 = arith.constant dense<0xFF800000> : vector<8xf32>
    %131 = vector.multi_reduction <maximumf>, %130, %cst_51 [1] : vector<8x8xf32> to vector<8xf32>
    %132 = vector.shape_cast %131 : vector<8xf32> to vector<8x1xf32>
    %133 = vector.broadcast %132 : vector<8x1xf32> to vector<8x8xf32>
    %134 = arith.subf %130, %133 : vector<8x8xf32>
    %135 = math.exp %134 : vector<8x8xf32>
    %cst_52 = arith.constant dense<0.000000e+00> : vector<8xf32>
    %136 = vector.multi_reduction <add>, %135, %cst_52 [1] : vector<8x8xf32> to vector<8xf32>
    %137 = vector.shape_cast %136 : vector<8xf32> to vector<8x1xf32>
    %138 = tpu.reciprocal %137 {approx = true} : vector<8x1xf32> -> vector<8x1xf32>
    %139 = vector.broadcast %138 : vector<8x1xf32> to vector<8x8xf32>
    %140 = arith.mulf %135, %139 : vector<8x8xf32>
    %cst_53 = arith.constant dense<0.000000e+00> : vector<8x8xf32>
    %141 = tpu.matmul %140, %125, %cst_53 {dimension_numbers = #tpu.dot_dimension_numbers<[1], [0], [0], [1], [0, 0, 1, 1], [], []>} : vector<8x8xf32>, vector<8x8xf32>, vector<8x8xf32> -> vector<8x8xf32>
    %c8_54 = arith.constant 8 : index
    %c8_55 = arith.constant 8 : index
    %142 = vector.load %arg9[%c8_54, %c8_55] : memref<16x32xf32, #tpu.memory_space<vmem>>, vector<8x8xf32>
    tpu.vector_store %arg9[%c8_54, %c8_55], %141 {strides = array<i32>} : memref<16x32xf32, #tpu.memory_space<vmem>>, vector<8x8xf32>,
    %143 = vector.extract_strided_slice %9 {offsets = [8, 16], sizes = [8, 8], strides = [1, 1]} : vector<16x32xf32> to vector<8x8xf32>
    %144 = vector.extract_strided_slice %14 {offsets = [8, 16], sizes = [8, 8], strides = [1, 1]} : vector<16x32xf32> to vector<8x8xf32>
    %145 = vector.extract_strided_slice %15 {offsets = [8, 16], sizes = [8, 8], strides = [1, 1]} : vector<16x32xf32> to vector<8x8xf32>
    %cst_56 = arith.constant dense<0.000000e+00> : vector<8x8xf32>
    %146 = tpu.matmul %143, %144, %cst_56 {dimension_numbers = #tpu.dot_dimension_numbers<[1], [1], [0], [0], [0, 0, 1, 0], [], []>} : vector<8x8xf32>, vector<8x8xf32>, vector<8x8xf32> -> vector<8x8xf32>
    %cst_57 = arith.constant 0.353553385 : f32
    %147 = vector.broadcast %cst_57 : f32 to vector<8x8xf32>
    %148 = arith.mulf %146, %147 : vector<8x8xf32>
    %cst_58 = arith.constant -1.000000e+30 : f32
    %149 = vector.broadcast %cst_58 : f32 to vector<8x8xf32>
    %150 = arith.select %22, %148, %149 : vector<8x8xi1>, vector<8x8xf32>
    %cst_59 = arith.constant dense<0xFF800000> : vector<8xf32>
    %151 = vector.multi_reduction <maximumf>, %150, %cst_59 [1] : vector<8x8xf32> to vector<8xf32>
    %152 = vector.shape_cast %151 : vector<8xf32> to vector<8x1xf32>
    %153 = vector.broadcast %152 : vector<8x1xf32> to vector<8x8xf32>
    %154 = arith.subf %150, %153 : vector<8x8xf32>
    %155 = math.exp %154 : vector<8x8xf32>
    %cst_60 = arith.constant dense<0.000000e+00> : vector<8xf32>
    %156 = vector.multi_reduction <add>, %155, %cst_60 [1] : vector<8x8xf32> to vector<8xf32>
    %157 = vector.shape_cast %156 : vector<8xf32> to vector<8x1xf32>
    %158 = tpu.reciprocal %157 {approx = true} : vector<8x1xf32> -> vector<8x1xf32>
    %159 = vector.broadcast %158 : vector<8x1xf32> to vector<8x8xf32>
    %160 = arith.mulf %155, %159 : vector<8x8xf32>
    %cst_61 = arith.constant dense<0.000000e+00> : vector<8x8xf32>
    %161 = tpu.matmul %160, %145, %cst_61 {dimension_numbers = #tpu.dot_dimension_numbers<[1], [0], [0], [1], [0, 0, 1, 1], [], []>} : vector<8x8xf32>, vector<8x8xf32>, vector<8x8xf32> -> vector<8x8xf32>
    %c8_62 = arith.constant 8 : index
    %c16_63 = arith.constant 16 : index
    %162 = vector.load %arg9[%c8_62, %c16_63] : memref<16x32xf32, #tpu.memory_space<vmem>>, vector<8x8xf32>
    tpu.vector_store %arg9[%c8_62, %c16_63], %161 {strides = array<i32>} : memref<16x32xf32, #tpu.memory_space<vmem>>, vector<8x8xf32>,
    %163 = vector.extract_strided_slice %9 {offsets = [8, 24], sizes = [8, 8], strides = [1, 1]} : vector<16x32xf32> to vector<8x8xf32>
    %164 = vector.extract_strided_slice %14 {offsets = [8, 24], sizes = [8, 8], strides = [1, 1]} : vector<16x32xf32> to vector<8x8xf32>
    %165 = vector.extract_strided_slice %15 {offsets = [8, 24], sizes = [8, 8], strides = [1, 1]} : vector<16x32xf32> to vector<8x8xf32>
    %cst_64 = arith.constant dense<0.000000e+00> : vector<8x8xf32>
    %166 = tpu.matmul %163, %164, %cst_64 {dimension_numbers = #tpu.dot_dimension_numbers<[1], [1], [0], [0], [0, 0, 1, 0], [], []>} : vector<8x8xf32>, vector<8x8xf32>, vector<8x8xf32> -> vector<8x8xf32>
    %cst_65 = arith.constant 0.353553385 : f32
    %167 = vector.broadcast %cst_65 : f32 to vector<8x8xf32>
    %168 = arith.mulf %166, %167 : vector<8x8xf32>
    %cst_66 = arith.constant -1.000000e+30 : f32
    %169 = vector.broadcast %cst_66 : f32 to vector<8x8xf32>
    %170 = arith.select %22, %168, %169 : vector<8x8xi1>, vector<8x8xf32>
    %cst_67 = arith.constant dense<0xFF800000> : vector<8xf32>
    %171 = vector.multi_reduction <maximumf>, %170, %cst_67 [1] : vector<8x8xf32> to vector<8xf32>
    %172 = vector.shape_cast %171 : vector<8xf32> to vector<8x1xf32>
    %173 = vector.broadcast %172 : vector<8x1xf32> to vector<8x8xf32>
    %174 = arith.subf %170, %173 : vector<8x8xf32>
    %175 = math.exp %174 : vector<8x8xf32>
    %cst_68 = arith.constant dense<0.000000e+00> : vector<8xf32>
    %176 = vector.multi_reduction <add>, %175, %cst_68 [1] : vector<8x8xf32> to vector<8xf32>
    %177 = vector.shape_cast %176 : vector<8xf32> to vector<8x1xf32>
    %178 = tpu.reciprocal %177 {approx = true} : vector<8x1xf32> -> vector<8x1xf32>
    %179 = vector.broadcast %178 : vector<8x1xf32> to vector<8x8xf32>
    %180 = arith.mulf %175, %179 : vector<8x8xf32>
    %cst_69 = arith.constant dense<0.000000e+00> : vector<8x8xf32>
    %181 = tpu.matmul %180, %165, %cst_69 {dimension_numbers = #tpu.dot_dimension_numbers<[1], [0], [0], [1], [0, 0, 1, 1], [], []>} : vector<8x8xf32>, vector<8x8xf32>, vector<8x8xf32> -> vector<8x8xf32>
    %c8_70 = arith.constant 8 : index
    %c24_71 = arith.constant 24 : index
    %182 = vector.load %arg9[%c8_70, %c24_71] : memref<16x32xf32, #tpu.memory_space<vmem>>, vector<8x8xf32>
    tpu.vector_store %arg9[%c8_70, %c24_71], %181 {strides = array<i32>} : memref<16x32xf32, #tpu.memory_space<vmem>>, vector<8x8xf32>,
    %c0_72 = arith.constant 0 : index
    %c0_73 = arith.constant 0 : index
    %183 = vector.load %arg9[%c0_72, %c0_73] : memref<16x32xf32, #tpu.memory_space<vmem>>, vector<16x32xf32>
    %c0_74 = arith.constant 0 : index
    %c0_75 = arith.constant 0 : index
    %184 = vector.load %arg5[%c0_74, %c0_75] : memref<32x32xf32, #tpu.memory_space<vmem>>, vector<32x32xf32>
    %cst_76 = arith.constant dense<0.000000e+00> : vector<16x32xf32>
    %185 = tpu.matmul %183, %184, %cst_76 {dimension_numbers = #tpu.dot_dimension_numbers<[1], [0], [0], [1], [0, 0, 1, 1], [], []>} : vector<16x32xf32>, vector<32x32xf32>, vector<16x32xf32> -> vector<16x32xf32>
    %c0_77 = arith.constant 0 : index
    %c0_78 = arith.constant 0 : index
    %186 = vector.load %arg6[%c0_77, %c0_78] : memref<16x32xf32, #tpu.memory_space<vmem>>, vector<16x32xf32>
    tpu.vector_store %arg6[%c0_77, %c0_78], %185 {strides = array<i32>} : memref<16x32xf32, #tpu.memory_space<vmem>>, vector<16x32xf32>,
    return
  }
  func.func @transform_0(%arg0: i32) -> (i32, i32) {
    %c0_i32 = arith.constant 0 : i32
    %c0_i32_0 = arith.constant 0 : i32
    %c0_i32_1 = arith.constant 0 : i32
    return %c0_i32, %c0_i32_0 : i32, i32
  }
  func.func @transform_1(%arg0: i32) -> (i32, i32) {
    %c0_i32 = arith.constant 0 : i32
    %c0_i32_0 = arith.constant 0 : i32
    %c0_i32_1 = arith.constant 0 : i32
    return %c0_i32, %c0_i32_0 : i32, i32
  }
  func.func @transform_2(%arg0: i32) -> (i32, i32) {
    %c0_i32 = arith.constant 0 : i32
    %c0_i32_0 = arith.constant 0 : i32
    %c0_i32_1 = arith.constant 0 : i32
    return %c0_i32, %c0_i32_0 : i32, i32
  }
  func.func @transform_3(%arg0: i32) -> (i32, i32) {
    %c0_i32 = arith.constant 0 : i32
    %c0_i32_0 = arith.constant 0 : i32
    %c0_i32_1 = arith.constant 0 : i32
    return %c0_i32, %c0_i32_0 : i32, i32
  }
  func.func @transform_4(%arg0: i32) -> (i32, i32) {
    %c0_i32 = arith.constant 0 : i32
    %c0_i32_0 = arith.constant 0 : i32
    %c0_i32_1 = arith.constant 0 : i32
    return %c0_i32, %c0_i32_0 : i32, i32
  }
  func.func @transform_5(%arg0: i32) -> (i32, i32) {
    %c0_i32 = arith.constant 0 : i32
    %c0_i32_0 = arith.constant 0 : i32
    %c0_i32_1 = arith.constant 0 : i32
    return %c0_i32, %c0_i32_0 : i32, i32
  }
  func.func @transform_6(%arg0: i32) -> (i32, i32) {
    %c0_i32 = arith.constant 0 : i32
    %c0_i32_0 = arith.constant 0 : i32
    %c0_i32_1 = arith.constant 0 : i32
    return %c0_i32, %c0_i32_0 : i32, i32
  }
  func.func @transform_7(%arg0: i32) -> (i32, i32) {
    %c0_i32 = arith.constant 0 : i32
    %c0_i32_0 = arith.constant 0 : i32
    %c0_i32_1 = arith.constant 0 : i32
    return %c0_i32, %c0_i32_0 : i32, i32
  }
}

</mosaic_0001>

<bundles_post_ra>
// kernel: tpu_custom_call.1
= control target key start
LH: loop header
LB: loop body
LE: loop exit
PB: predicated region body
PF: predicated region fallthrough
CT: control target
= control target key end

     0   :  { %13 = vsyncpa [#allocation4], 0  ;;  %s2436_s0 = inlined_call_operand.hbm [shape: f32[16,32], index: 0, kind: input, shape index: {}]   ;;  %s2437_s1 = inlined_call_operand.hbm [shape: f32[32,224], index: 1, kind: input, shape index: {}]   ;;  %s2438_s2 = inlined_call_operand.hbm [shape: f32[16,32], index: 2, kind: input, shape index: {}]   ;;  %s2439_s3 = inlined_call_operand.hbm [shape: f32[16,32], index: 3, kind: input, shape index: {}]   ;;  %s2440_s4 = inlined_call_operand.hbm [shape: f32[32,32], index: 4, kind: input, shape index: {}]   ;;  %s2441_s5 = inlined_call_operand.hbm [shape: f32[16,32], index: 5, kind: output, shape index: {0}]   ;;  %s2442_s6 = inlined_call_operand.hbm [shape: f32[16,32], index: 6, kind: output, shape index: {1}]   ;;  %s2443_s7 = inlined_call_operand.hbm [shape: f32[16,32], index: 7, kind: output, shape index: {2}]  }
   0x1   :  { %14 = vsyncpa [#allocation7], 0 }
   0x2   :  { %15 = vsyncpa [#allocation10], 0 }
   0x3   :  { %16 = vsyncpa [#allocation5], 0 }
   0x4   :  { %17 = vsyncpa [#allocation14], 0  ;;  %s2152_s24 = smov [#allocation6]  }
   0x5   :  { %s35_s25 = sshll.u32 %s2152_s24, 4  ;;  %s36_s25 = int_to_ptr.vmem [resolvable:$true] %s35_s25 }
   0x6   :  { %s1990_s26 = scalar_lea.vmem %s36_s25, 1024  ;;  %p1995_p1 = scmp.lt.s32.totalorder %s36_s25, %s36_s25 }
   0x7   :  { %p1991_p0 = scmp.ne.s32.totalorder %s36_s25, %s1990_s26  ;;  %p1996_p2 = scmp.lt.s32.totalorder %s1990_s26, %s1990_s26 }
   0x9   :  { %p1997_p3 = por %p1996_p2, %p1995_p1 }
   0xb   :  { %p1998_p4 = pnand %p1997_p3, %p1991_p0 }
   0xd   :  { %2001 = shalt.err (!%p1998_p4)
}
   0xe   :  { %s2153_s27 = smov 256   ;;  %s2154_s28 = smov 16  }
   0xf   :  { %41 = dma.hbm_to_vmem [thread:$0]  %s2437_s1, 1024, %s36_s25, [#allocation7], %s2153_s27, %s2153_s27, %s2154_s28  }
  0x10   :  { %s2155_s8 = smov [#allocation9]   ;;  %s2156_s10 = smov [#allocation3]  }
  0x11   :  { %s59_s9 = sshll.u32 %s2155_s8, 4  ;;  %s23_s11 = sshll.u32 %s2156_s10, 4  ;;  %s60_s9 = int_to_ptr.vmem [resolvable:$true] %s59_s9  ;;  %s24_s11 = int_to_ptr.vmem [resolvable:$true] %s23_s11 }
  0x12   :  { %s2010_s12 = scalar_lea.vmem %s60_s9, 256  ;;  %p2015_p6 = scmp.lt.s32.totalorder %s60_s9, %s60_s9 }
  0x13   :  { %p2011_p5 = scmp.ne.s32.totalorder %s60_s9, %s2010_s12  ;;  %p2016_p7 = scmp.lt.s32.totalorder %s2010_s12, %s2010_s12 }
  0x15   :  { %p2017_p8 = por %p2016_p7, %p2015_p6 }
  0x17   :  { %p2018_p9 = pnand %p2017_p8, %p2011_p5 }
  0x19   :  { %2021 = shalt.err (!%p2018_p9)
}
  0x1a   :  { %s2157_s13 = smov 128   ;;  %s2158_s14 = smov 8  }
  0x1b   :  { %65 = dma.hbm_to_vmem [thread:$0]  %s2439_s3, 256, %s60_s9, [#allocation10], %s2157_s13, %s2157_s13, %s2158_s14  }
  0x1c   :  { %s2030_s1 = scalar_lea.vmem %s24_s11, 256  ;;  %p2035_p11 = scmp.lt.s32.totalorder %s24_s11, %s24_s11 }
  0x1d   :  { %p2031_p10 = scmp.ne.s32.totalorder %s24_s11, %s2030_s1  ;;  %p2036_p12 = scmp.lt.s32.totalorder %s2030_s1, %s2030_s1 }
  0x1f   :  { %p2037_p13 = por %p2036_p12, %p2035_p11 }
  0x21   :  { %p2038_p0 = pnand %p2037_p13, %p2031_p10 }
  0x23   :  { %2041 = shalt.err (!%p2038_p0)
}
  0x24   :  { %29 = dma.hbm_to_vmem [thread:$0]  %s2436_s0, 256, %s24_s11, [#allocation4], %s2157_s13, %s2157_s13, %s2158_s14  }
  0x25   :  { %s2159_s19 = smov [#allocation8]   ;;  %s2160_s21 = smov [#allocation11]  }
  0x26   :  { %s47_s20 = sshll.u32 %s2159_s19, 4  ;;  %s71_s3 = sshll.u32 %s2160_s21, 4  ;;  %s48_s20 = int_to_ptr.vmem [resolvable:$true] %s47_s20  ;;  %s72_s3 = int_to_ptr.vmem [resolvable:$true] %s71_s3 }
  0x27   :  { %s2050_s22 = scalar_lea.vmem %s48_s20, 256  ;;  %p2055_p2 = scmp.lt.s32.totalorder %s48_s20, %s48_s20 }
  0x28   :  { %p2051_p1 = scmp.ne.s32.totalorder %s48_s20, %s2050_s22  ;;  %p2056_p3 = scmp.lt.s32.totalorder %s2050_s22, %s2050_s22 }
  0x2a   :  { %p2057_p4 = por %p2056_p3, %p2055_p2 }
  0x2c   :  { %p2058_p5 = pnand %p2057_p4, %p2051_p1 }
  0x2e   :  { %2061 = shalt.err (!%p2058_p5)
}
  0x2f   :  { %53 = dma.hbm_to_vmem [thread:$0]  %s2438_s2, 256, %s48_s20, [#allocation7], %s2157_s13, %s2157_s13, %s2158_s14  }
  0x30   :  { %s2070_s0 = scalar_lea.vmem %s72_s3, 512  ;;  %p2075_p7 = scmp.lt.s32.totalorder %s72_s3, %s72_s3 }
  0x31   :  { %p2071_p6 = scmp.ne.s32.totalorder %s72_s3, %s2070_s0  ;;  %p2076_p8 = scmp.lt.s32.totalorder %s2070_s0, %s2070_s0 }
  0x33   :  { %p2077_p9 = por %p2076_p8, %p2075_p7 }
  0x35   :  { %p2078_p10 = pnand %p2077_p9, %p2071_p6 }
  0x37   :  { %2081 = shalt.err (!%p2078_p10)
}
  0x38   :  { %77 = dma.hbm_to_vmem [thread:$0]  %s2440_s4, 512, %s72_s3, [#allocation10], %s2157_s13, %s2157_s13, %s2158_s14  }
  0x39   :  { %2142 = dma.done.wait [#allocation4], 256  }
  0x3a   :  { %2143 = vsyncadd [#allocation4], 4294967040 }
  0x3b   :  { %2144 = dma.done.wait [#allocation7], 1280  }
  0x3c   :  { %2145 = vsyncadd [#allocation7], 4294966016 }
  0x3d   :  { %2146 = dma.done.wait [#allocation10], 768  }
  0x3e   :  { %2147 = vsyncadd [#allocation10], 4294966528  ;;  %v2161_v0 = vmov 0.0   ;;  %v102_v1 = vld [vmem:[#allocation6 + $0x38] sm:$0xff]  ;;  %v101_v2 = vld [vmem:[#allocation6 + $0x30] sm:$0xff]  ;;  %s2162_s2 = smov 96   ;;  %v259_v34 = vlaneseq }
  0x3f   :  { %174 = vmatprep.mubr.f32.mxu0 %v2161_v0  ;;  %1835 = vmatprep.subr.mxu1 %v2161_v0  ;;  %v100_v3 = vld [vmem:[#allocation6 + $0x28] sm:$0xff]  ;;  %v99_v4 = vld [vmem:[#allocation6 + $0x20] sm:$0xff]  ;;  %v98_v5 = vld [vmem:[#allocation6 + $0x18] sm:$0xff]  ;;  %vm103_vm0 = vcmask 261120   ;;  %s2163_s4 = smov 64   ;;  %s2164_s27 = smov 32  }
  0x40   :  { %134 = vmatprep.subr.mxu0 %v102_v1  ;;  %v97_v6 = vld [vmem:[#allocation6 + $0x10] sm:$0xff]  ;;  %v96_v8 = vld [vmem:[#allocation6 + $0x8] sm:$0xff]  ;;  %v95_v9 = vld [vmem:[#allocation6] sm:$0xff]  ;;  %vm2165_vm1 = vmmov 0   ;;  %vm267_vm2 = vcmask 64512   ;;  %v260_v35 = vshrl.u32 %v259_v34, 7 }
  0x41   :  { %135 = vmatpush1.msra.mxu0 %v101_v2  ;;  %v189_v7 = vld [vmem:[#allocation9] sm:$0xff]  ;;  %v187_v10 = vld [vmem:[#allocation8] sm:$0xff]  ;;  %v94_v12 = vld [vmem:[#allocation3 + $0x8] sm:$0xff]  ;;  %1837 = vmatprep.mubr.msk.f32.mxu1 %vm2165_vm1, %v2161_v0  ;;  %v262_v36 = vand.u32 127, %v259_v34  ;;  %s2166_s29 = smov 56   ;;  %s2167_s30 = smov 120  }
  0x42   :  { %136 = vmatprep.subr.mxu0 %v100_v3  ;;  %223 = vrot.lane.b32.xlu0 %v189_v7, %s2162_s2  ;;  %v93_v11 = vld [vmem:[#allocation3] sm:$0xff]  ;;  %v190_v22 = vld [vmem:[#allocation9 + $0x8] sm:$0xff]  ;;  %v188_v23 = vld [vmem:[#allocation8 + $0x8] sm:$0xff]  ;;  %s2168_s8 = smov 112   ;;  %s2169_s9 = smov 40   ;;  %vm601_vm4 = vcmask 130112  }
  0x43   :  { %137 = vmatpush1.msra.mxu0 %v99_v4  ;;  %vm2275_vm3 = vcmp.le.s32.totalorder %v262_v36, %v260_v35  ;;  %s2170_s10 = smov 104   ;;  %s2171_s11 = smov 48   ;;  %vm774_vm5 = vcmask 195712   ;;  %vm947_vm6 = vcmask 261312  }
  0x44   :  { %138 = vmatprep.subr.mxu0 %v98_v5  ;;  %s2172_s12 = smov 24  }
  0x45   :  { %139 = vmatpush1.msra.mxu0 %v97_v6 }
  0x46   :  { %140 = vmatprep.subr.mxu0 %v96_v8  ;;  %215 = vrot.lane.b32.xlu0 %v187_v10, %s2163_s4 }
  0x47   :  { %141 = vmatpush1.msra.mxu0 %v95_v9 }
  0x48   :  { %1769 = vmatmul.mubr.msk.f32.vlgmr.msra.gmra.mxu0 %vm103_vm0, %v93_v11  ;;  %1850 = vmatprep.subr.mxu0 %v2161_v0 }
  0x49   :  { %180 = vmatprep.mubr.f32.mxu0 %v2161_v0 }
  0x4c   :  { %1770 = vmatmul.mubr.msk.f32.gmra.mxu0 %vm103_vm0, %v94_v12 }
  0x4d   :  { %1852 = vmatprep.mubr.msk.f32.mxu0 %vm2165_vm1, %v2161_v0 }
  0xb4   :  { %v224_v13 = vpop.permute.xlu0 %223 }
  0xb8   :  { %v216_v16 = vpop.permute.xlu0 %215 }
 0x108   :  { %v176_v14 = vpop.f32.mrf.mxu0 }
 0x109   :  { %v229_v15 = vmul.f32 %v224_v13, %v176_v14  ;;  %v221_v17 = vmul.f32 %v216_v16, %v176_v14  ;;  %v191_v25 = vmul.f32 %v187_v10, %v176_v14 }
 0x10a   :  { %v2266_v26 = vpop.f32.mrf.mxu0 }
 0x10b   :  { %233 = vrot.lane.b32.xlu1 %v229_v15, %s2162_s2 }
 0x10c   :  { %v182_v29 = vpop.f32.mrf.mxu0 }
 0x10d   :  { %v192_v52 = vmul.f32 %v188_v23, %v182_v29 }
 0x10f   :  { %195 = vrot.lane.b32.xlu1 %v189_v7, %s2164_s27 }
 0x17d   :  { %v234_v18 = vpop.permute.xlu1 %233 }
 0x17e   :  { %v2257_v19 = vadd.f32 %v234_v18, %v221_v17 }
 0x180   :  { %265 = vrot.lane.b32.xlu0 %v2257_v19, %s2163_s4 }
 0x181   :  { %v196_v20 = vpop.permute.xlu1 %195 }
 0x182   :  { %v201_v21 = vmul.f32 %v196_v20, %v176_v14 }
 0x184   :  { %205 = vrot.lane.b32.xlu1 %v201_v21, %s2162_s2 }
 0x188   :  { %225 = vrot.lane.b32.xlu1 %v190_v22, %s2162_s2 }
 0x18c   :  { %197 = vrot.lane.b32.xlu1 %v190_v22, %s2164_s27 }
 0x190   :  { %217 = vrot.lane.b32.xlu1 %v188_v23, %s2163_s4 }
 0x1f2   :  { %v266_v24 = vpop.permute.xlu0 %265 }
 0x1f3   :  { %1836 = vmatpush3.xpose.msk.msra.mxu1 %vm267_vm2, %v266_v24 }
 0x1f4   :  { %1840 = vmatprep.subr.mxu1 %v2161_v0 }
 0x1f6   :  { %v206_v27 = vpop.permute.xlu1 %205 }
 0x1f7   :  { %v211_v28 = vadd.f32 %v206_v27, %v191_v25 }
 0x1f9   :  { %1838 = vmatmul.mubr.msk.f32.vlgmr.msra.gmra.mxu1 %vm267_vm2, %v211_v28 }
 0x1fa   :  { %1841 = vmatpush3.msra.mxu1 %v2266_v26  ;;  %v226_v30 = vpop.permute.xlu1 %225  ;;  %1842 = vmatprep.mubr.msk.f32.mxu1 %vm2165_vm1, %v2161_v0 }
 0x1fb   :  { %v230_v31 = vmul.f32 %v226_v30, %v182_v29  ;;  %1845 = vmatprep.subr.mxu1 %v2161_v0 }
 0x1fd   :  { %235 = vrot.lane.b32.xlu1 %v230_v31, %s2162_s2 }
 0x1fe   :  { %v198_v32 = vpop.permute.xlu1 %197 }
 0x1ff   :  { %v202_v33 = vmul.f32 %v198_v32, %v182_v29 }
 0x201   :  { %207 = vrot.lane.b32.xlu1 %v202_v33, %s2162_s2 }
 0x202   :  { %v218_v43 = vpop.permute.xlu1 %217 }
 0x203   :  { %v222_v44 = vmul.f32 %v218_v43, %v182_v29 }
 0x26f   :  { %v236_v45 = vpop.permute.xlu1 %235 }
 0x270   :  { %v240_v46 = vadd.f32 %v236_v45, %v222_v44 }
 0x273   :  { %v208_v53 = vpop.permute.xlu1 %207 }
 0x274   :  { %v212_v54 = vadd.f32 %v208_v53, %v192_v52 }
 0x2b9   :  { %v339_v37 = vpop.f32.mrf.mxu1 }
 0x2ba   :  { %v343_v39 = vmul.f32 0.35355338, %v339_v37 }
 0x2bb   :  { %v1839_v40 = vpop.f32.mrf.mxu1 }
 0x2bc   :  { %v344_v41 = vsel %vm2275_vm3, %v343_v39, -1e+30 }
 0x2bd   :  { %v345_v42 = vsel %vm267_vm2, %v344_v41, -inf }
 0x2be   :  { %346 = vmax.xlane.f32.xlu0 %v345_v42 }
 0x2d4   :  { %432 = vrot.lane.b32.xlu0 %v2257_v19, %s2166_s29 }
 0x2d8   :  { %430 = vrot.lane.b32.xlu0 %v211_v28, %s2167_s30 }
 0x2dc   :  { %603 = vrot.lane.b32.xlu0 %v211_v28, %s2168_s8 }
 0x2e0   :  { %778 = vrot.lane.b32.xlu0 %v2257_v19, %s2169_s9 }
 0x2e4   :  { %776 = vrot.lane.b32.xlu0 %v211_v28, %s2170_s10 }
 0x2e8   :  { %950 = vrot.lane.b32.xlu0 %v240_v46, %s2163_s4 }
 0x2ec   :  { %1116 = vrot.lane.b32.xlu0 %v240_v46, %s2166_s29 }
 0x2f0   :  { %1288 = vrot.lane.b32.xlu0 %v240_v46, %s2171_s11 }
 0x2f4   :  { %1460 = vrot.lane.b32.xlu0 %v240_v46, %s2169_s9 }
 0x347   :  { %v347_v47 = vpop.xlane.xlu0 %346 }
 0x348   :  { %v348_v48 = vsub.f32 %v344_v41, %v347_v47 }
 0x34a   :  { %v349_v49 = vmul.f32 1.442695, %v348_v48 }
 0x34b   :  { %v433_v55 = vpop.permute.xlu0 %432 }
 0x34c   :  { %1950 = vpow2.f32 %v349_v49 }
 0x34f   :  { %v431_v57 = vpop.permute.xlu0 %430 }
 0x353   :  { %v604_v58 = vpop.permute.xlu0 %603 }
 0x357   :  { %v779_v59 = vpop.permute.xlu0 %778 }
 0x359   :  { %v1951_v50 = vpop.eup %1950 }
 0x35a   :  { %v351_v51 = vsel %vm267_vm2, %v1951_v50, 0.0 }
 0x35b   :  { %352 = vadd.xlane.f32.xlu1 %v351_v51  ;;  %v777_v62 = vpop.permute.xlu0 %776 }
 0x35f   :  { %v951_v1 = vpop.permute.xlu0 %950 }
 0x363   :  { %v1117_v2 = vpop.permute.xlu0 %1116 }
 0x367   :  { %v1289_v4 = vpop.permute.xlu0 %1288 }
 0x36b   :  { %v1461_v6 = vpop.permute.xlu0 %1460 }
 0x36c   :  { %605 = vrot.lane.b32.xlu1 %v2257_v19, %s2171_s11 }
 0x370   :  { %1114 = vrot.lane.b32.xlu1 %v212_v54, %s2167_s30 }
 0x374   :  { %1286 = vrot.lane.b32.xlu1 %v212_v54, %s2168_s8 }
 0x378   :  { %1458 = vrot.lane.b32.xlu1 %v212_v54, %s2170_s10 }
 0x3e4   :  { %v353_v56 = vpop.xlane.xlu1 %352 }
 0x3e5   :  { %1952 = vrcp.f32 %v353_v56 }
 0x3e8   :  { %v606_v63 = vpop.permute.xlu1 %605 }
 0x3ec   :  { %v1115_v3 = vpop.permute.xlu1 %1114 }
 0x3f0   :  { %v1287_v5 = vpop.permute.xlu1 %1286 }
 0x3f2   :  { %v1953_v60 = vpop.eup %1952 }
 0x3f3   :  { %v355_v61 = vmul.f32 %v1953_v60, %v1951_v50 }
 0x3f4   :  { %v1459_v7 = vpop.permute.xlu1 %1458 }
 0x3f5   :  { %1843 = vmatmul.mubr.msk.f32.vlgmr.msra.gmra.mxu1 %vm267_vm2, %v355_v61 }
 0x3f6   :  { %1846 = vmatpush3.xpose.msk.msra.mxu1 %vm267_vm2, %v433_v55  ;;  %1847 = vmatprep.mubr.msk.f32.mxu1 %vm2165_vm1, %v2161_v0 }
 0x3f7   :  { %1855 = vmatprep.subr.mxu1 %v2161_v0 }
 0x3f9   :  { %1848 = vmatmul.mubr.msk.f32.vlgmr.msra.gmra.mxu1 %vm267_vm2, %v431_v57 }
 0x3fa   :  { %1856 = vmatpush3.xpose.msk.msra.mxu1 %vm267_vm2, %v606_v63  ;;  %1857 = vmatprep.mubr.msk.f32.mxu1 %vm2165_vm1, %v2161_v0 }
 0x3fb   :  { %1865 = vmatprep.subr.mxu1 %v2161_v0 }
 0x3fd   :  { %1858 = vmatmul.mubr.msk.f32.vlgmr.msra.gmra.mxu1 %vm267_vm2, %v604_v58  ;;  %v2357_v58 = vpop.f32.mrf.mxu0 }
 0x3fe   :  { %1866 = vmatpush3.xpose.msk.msra.mxu1 %vm267_vm2, %v779_v59  ;;  %1867 = vmatprep.mubr.msk.f32.mxu1 %vm2165_vm1, %v2161_v0 }
 0x3ff   :  { %1875 = vmatprep.subr.mxu1 %v2161_v0 }
 0x401   :  { %1868 = vmatmul.mubr.msk.f32.vlgmr.msra.gmra.mxu1 %vm267_vm2, %v777_v62 }
 0x402   :  { %1876 = vmatpush3.xpose.msk.msra.mxu1 %vm267_vm2, %v951_v1  ;;  %1877 = vmatprep.mubr.msk.f32.mxu1 %vm2165_vm1, %v2161_v0 }
 0x403   :  { %1885 = vmatprep.subr.mxu1 %v2161_v0 }
 0x405   :  { %1878 = vmatmul.mubr.msk.f32.vlgmr.msra.gmra.mxu1 %vm267_vm2, %v212_v54 }
 0x406   :  { %1886 = vmatpush3.xpose.msk.msra.mxu1 %vm267_vm2, %v1117_v2  ;;  %1887 = vmatprep.mubr.msk.f32.mxu1 %vm2165_vm1, %v2161_v0 }
 0x407   :  { %1895 = vmatprep.subr.mxu1 %v2161_v0 }
 0x409   :  { %1888 = vmatmul.mubr.msk.f32.vlgmr.msra.gmra.mxu1 %vm267_vm2, %v1115_v3 }
 0x40a   :  { %1896 = vmatpush3.xpose.msk.msra.mxu1 %vm267_vm2, %v1289_v4  ;;  %1897 = vmatprep.mubr.msk.f32.mxu1 %vm2165_vm1, %v2161_v0 }
 0x40b   :  { %1905 = vmatprep.subr.mxu1 %v2161_v0 }
 0x40d   :  { %1898 = vmatmul.mubr.msk.f32.vlgmr.msra.gmra.mxu1 %vm267_vm2, %v1287_v5 }
 0x40e   :  { %1906 = vmatpush3.xpose.msk.msra.mxu1 %vm267_vm2, %v1461_v6  ;;  %1907 = vmatprep.mubr.msk.f32.mxu1 %vm2165_vm1, %v2161_v0 }
 0x411   :  { %1908 = vmatmul.mubr.msk.f32.vlgmr.msra.gmra.mxu1 %vm267_vm2, %v1459_v7 }
 0x4b5   :  { %v425_v8 = vpop.f32.mrf.mxu1 }
 0x4b6   :  { %429 = vst.msk [vmem:[#allocation2] sm:$0xff] %vm267_vm2, %v425_v8 }
 0x4b7   :  { %v1844_v9 = vpop.f32.mrf.mxu1 }
 0x4b9   :  { %v504_v10 = vpop.f32.mrf.mxu1 }
 0x4ba   :  { %v508_v11 = vmul.f32 0.35355338, %v504_v10 }
 0x4bb   :  { %v1849_v12 = vpop.f32.mrf.mxu1 }
 0x4bc   :  { %v509_v13 = vsel %vm2275_vm3, %v508_v11, -1e+30 }
 0x4bd   :  { %v677_v14 = vpop.f32.mrf.mxu1  ;;  %v510_v15 = vsel %vm267_vm2, %v509_v13, -inf }
 0x4be   :  { %v681_v16 = vmul.f32 0.35355338, %v677_v14  ;;  %511 = vmax.xlane.f32.xlu0 %v510_v15 }
 0x4bf   :  { %v1859_v17 = vpop.f32.mrf.mxu1 }
 0x4c0   :  { %v682_v18 = vsel %vm2275_vm3, %v681_v16, -1e+30 }
 0x4c1   :  { %v850_v19 = vpop.f32.mrf.mxu1  ;;  %v683_v20 = vsel %vm267_vm2, %v682_v18, -inf }
 0x4c2   :  { %v854_v21 = vmul.f32 0.35355338, %v850_v19  ;;  %684 = vmax.xlane.f32.xlu1 %v683_v20 }
 0x4c3   :  { %v1869_v22 = vpop.f32.mrf.mxu1 }
 0x4c4   :  { %v855_v23 = vsel %vm2275_vm3, %v854_v21, -1e+30 }
 0x4c5   :  { %v1023_v24 = vpop.f32.mrf.mxu1  ;;  %v856_v25 = vsel %vm267_vm2, %v855_v23, -inf }
 0x4c6   :  { %v1027_v27 = vmul.f32 0.35355338, %v1023_v24  ;;  %857 = vmax.xlane.f32.xlu0 %v856_v25 }
 0x4c7   :  { %v1879_v28 = vpop.f32.mrf.mxu1 }
 0x4c8   :  { %v1028_v29 = vsel %vm2275_vm3, %v1027_v27, -1e+30 }
 0x4c9   :  { %v1188_v30 = vpop.f32.mrf.mxu1  ;;  %v1029_v31 = vsel %vm267_vm2, %v1028_v29, -inf }
 0x4ca   :  { %v1192_v32 = vmul.f32 0.35355338, %v1188_v30  ;;  %1030 = vmax.xlane.f32.xlu0 %v1029_v31 }
 0x4cb   :  { %v1889_v33 = vpop.f32.mrf.mxu1 }
 0x4cc   :  { %v1193_v34 = vsel %vm2275_vm3, %v1192_v32, -1e+30 }
 0x4cd   :  { %v1360_v35 = vpop.f32.mrf.mxu1  ;;  %v1194_v36 = vsel %vm267_vm2, %v1193_v34, -inf }
 0x4ce   :  { %v1364_v37 = vmul.f32 0.35355338, %v1360_v35  ;;  %1195 = vmax.xlane.f32.xlu1 %v1194_v36 }
 0x4cf   :  { %v1899_v39 = vpop.f32.mrf.mxu1 }
 0x4d0   :  { %v1365_v40 = vsel %vm2275_vm3, %v1364_v37, -1e+30 }
 0x4d1   :  { %v1532_v41 = vpop.f32.mrf.mxu1  ;;  %v1366_v42 = vsel %vm267_vm2, %v1365_v40, -inf }
 0x4d2   :  { %1367 = vmax.xlane.f32.xlu0 %v1366_v42  ;;  %v1536_v44 = vmul.f32 0.35355338, %v1532_v41 }
 0x4d3   :  { %v1909_v43 = vpop.f32.mrf.mxu1 }
 0x4d4   :  { %v1537_v45 = vsel %vm2275_vm3, %v1536_v44, -1e+30 }
 0x4d5   :  { %v1538_v46 = vsel %vm267_vm2, %v1537_v45, -inf }
 0x4df   :  { %521 = vrot.lane.b32.xlu1 %v2266_v26, %s2167_s30 }
 0x503   :  { %1539 = vmax.xlane.f32.xlu1 %v1538_v46 }
 0x514   :  { %867 = vrot.lane.b32.xlu1 %v2266_v26, %s2170_s10 }
 0x547   :  { %v512_v47 = vpop.xlane.xlu0 %511 }
 0x548   :  { %v513_v48 = vsub.f32 %v509_v13, %v512_v47 }
 0x54a   :  { %v514_v49 = vmul.f32 1.442695, %v513_v48 }
 0x54b   :  { %v685_v50 = vpop.xlane.xlu1 %684 }
 0x54c   :  { %1954 = vpow2.f32 %v514_v49  ;;  %v686_v51 = vsub.f32 %v682_v18, %v685_v50 }
 0x54e   :  { %v687_v52 = vmul.f32 1.442695, %v686_v51 }
 0x54f   :  { %v858_v59 = vpop.xlane.xlu0 %857 }
 0x550   :  { %1956 = vpow2.f32 %v687_v52  ;;  %v859_v60 = vsub.f32 %v855_v23, %v858_v59  ;;  %v1632_v59 = vld [vmem:[#allocation11] sm:$0xff] }
 0x552   :  { %v860_v63 = vmul.f32 1.442695, %v859_v60 }
 0x553   :  { %v1031_v61 = vpop.xlane.xlu0 %1030 }
 0x554   :  { %v1032_v62 = vsub.f32 %v1028_v29, %v1031_v61  ;;  %1958 = vpow2.f32 %v860_v63 }
 0x556   :  { %v1033_v3 = vmul.f32 1.442695, %v1032_v62 }
 0x557   :  { %v1196_v53 = vpop.xlane.xlu1 %1195 }
 0x558   :  { %v1197_v1 = vsub.f32 %v1193_v34, %v1196_v53  ;;  %1960 = vpow2.f32 %v1033_v3 }
 0x559   :  { %v1955_v54 = vpop.eup %1954 }
 0x55a   :  { %v516_v55 = vsel %vm267_vm2, %v1955_v54, 0.0  ;;  %v1198_v4 = vmul.f32 1.442695, %v1197_v1 }
 0x55b   :  { %v522_v38 = vpop.permute.xlu1 %521  ;;  %517 = vadd.xlane.f32.xlu0 %v516_v55  ;;  %v1368_v2 = vpop.xlane.xlu0 %1367  ;;  %v1635_v55 = vld [vmem:[#allocation11 + $0x18] sm:$0xff] }
 0x55c   :  { %1851 = vmatpush3.msra.mxu0 %v522_v38  ;;  %v1369_v5 = vsub.f32 %v1365_v40, %v1368_v2  ;;  %1962 = vpow2.f32 %v1198_v4  ;;  %v1634_v38 = vld [vmem:[#allocation11 + $0x10] sm:$0xff]  ;;  %1915 = vmatprep.subr.mxu1 %v1635_v55 }
 0x55d   :  { %v1957_v56 = vpop.eup %1956  ;;  %1860 = vmatprep.subr.mxu0 %v2161_v0  ;;  %1916 = vmatpush3.msra.mxu1 %v1635_v55 }
 0x55e   :  { %v689_v57 = vsel %vm267_vm2, %v1957_v56, 0.0  ;;  %v1370_v6 = vmul.f32 1.442695, %v1369_v5  ;;  %1917 = vmatprep.subr.mxu1 %v1634_v38 }
 0x55f   :  { %690 = vadd.xlane.f32.xlu1 %v689_v57  ;;  %1918 = vmatpush3.msra.mxu1 %v1634_v38  ;;  %v1633_v57 = vld [vmem:[#allocation11 + $0x8] sm:$0xff] }
 0x560   :  { %1964 = vpow2.f32 %v1370_v6  ;;  %1919 = vmatprep.subr.mxu1 %v1633_v57 }
 0x561   :  { %v1959_v7 = vpop.eup %1958  ;;  %1920 = vmatpush3.msra.mxu1 %v1633_v57 }
 0x562   :  { %v862_v12 = vsel %vm267_vm2, %v1959_v7, 0.0  ;;  %1921 = vmatprep.subr.mxu1 %v1632_v59 }
 0x563   :  { %1922 = vmatpush3.msra.mxu1 %v1632_v59 }
 0x565   :  { %v1961_v10 = vpop.eup %1960 }
 0x566   :  { %v1035_v15 = vsel %vm267_vm2, %v1961_v10, 0.0 }
 0x569   :  { %v1963_v13 = vpop.eup %1962 }
 0x56a   :  { %v1200_v14 = vsel %vm267_vm2, %v1963_v13, 0.0 }
 0x56d   :  { %v1965_v16 = vpop.eup %1964 }
 0x56e   :  { %v1372_v17 = vsel %vm267_vm2, %v1965_v16, 0.0 }
 0x570   :  { %1205 = vrot.lane.b32.xlu1 %v2357_v58, %s2167_s30 }
 0x571   :  { %694 = vrot.lane.b32.xlu0 %v2266_v26, %s2168_s8 }
 0x58c   :  { %v1540_v8 = vpop.xlane.xlu1 %1539 }
 0x58d   :  { %v1541_v9 = vsub.f32 %v1537_v45, %v1540_v8 }
 0x58f   :  { %v1542_v11 = vmul.f32 1.442695, %v1541_v9 }
 0x590   :  { %863 = vadd.xlane.f32.xlu0 %v862_v12  ;;  %v868_v20 = vpop.permute.xlu1 %867 }
 0x591   :  { %1966 = vpow2.f32 %v1542_v11 }
 0x594   :  { %1201 = vadd.xlane.f32.xlu0 %v1200_v14  ;;  %1036 = vadd.xlane.f32.xlu1 %v1035_v15 }
 0x598   :  { %1373 = vadd.xlane.f32.xlu1 %v1372_v17 }
 0x59e   :  { %v1967_v18 = vpop.eup %1966 }
 0x59f   :  { %v1544_v19 = vsel %vm267_vm2, %v1967_v18, 0.0 }
 0x5a0   :  { %1545 = vadd.xlane.f32.xlu0 %v1544_v19 }
 0x5a9   :  { %1549 = vrot.lane.b32.xlu1 %v2357_v58, %s2170_s10 }
 0x5b6   :  { %1377 = vrot.lane.b32.xlu0 %v2357_v58, %s2168_s8 }
 0x5e4   :  { %v518_v21 = vpop.xlane.xlu0 %517 }
 0x5e5   :  { %1968 = vrcp.f32 %v518_v21 }
 0x5e8   :  { %v691_v22 = vpop.xlane.xlu1 %690  ;;  %v695_v25 = vpop.permute.xlu0 %694 }
 0x5e9   :  { %1970 = vrcp.f32 %v691_v22 }
 0x5ec   :  { %v1206_v29 = vpop.permute.xlu1 %1205 }
 0x5f2   :  { %v1969_v23 = vpop.eup %1968 }
 0x5f3   :  { %v520_v24 = vmul.f32 %v1969_v23, %v1955_v54 }
 0x5f5   :  { %1853 = vmatmul.mubr.msk.f32.vlgmr.msra.gmra.mxu0 %vm267_vm2, %v520_v24 }
 0x5f6   :  { %v1971_v27 = vpop.eup %1970  ;;  %1861 = vmatpush3.msra.mxu0 %v695_v25  ;;  %1862 = vmatprep.mubr.msk.f32.mxu0 %vm2165_vm1, %v2161_v0 }
 0x5f7   :  { %1870 = vmatprep.subr.mxu0 %v2161_v0  ;;  %v693_v28 = vmul.f32 %v1971_v27, %v1957_v56 }
 0x5f9   :  { %1863 = vmatmul.mubr.msk.f32.vlgmr.msra.gmra.mxu0 %vm267_vm2, %v693_v28 }
 0x5fa   :  { %1871 = vmatpush3.msra.mxu0 %v868_v20  ;;  %1872 = vmatprep.mubr.msk.f32.mxu0 %vm2165_vm1, %v2161_v0 }
 0x5fb   :  { %1880 = vmatprep.subr.mxu0 %v2161_v0 }
 0x619   :  { %v864_v30 = vpop.xlane.xlu0 %863 }
 0x61a   :  { %1972 = vrcp.f32 %v864_v30 }
 0x61d   :  { %v1037_v31 = vpop.xlane.xlu1 %1036  ;;  %v1202_v32 = vpop.xlane.xlu0 %1201 }
 0x61e   :  { %1974 = vrcp.f32 %v1037_v31 }
 0x61f   :  { %1976 = vrcp.f32 %v1202_v32 }
 0x621   :  { %v1374_v33 = vpop.xlane.xlu1 %1373 }
 0x622   :  { %1978 = vrcp.f32 %v1374_v33 }
 0x625   :  { %v1550_v46 = vpop.permute.xlu1 %1549 }
 0x627   :  { %v1973_v34 = vpop.eup %1972 }
 0x628   :  { %v866_v35 = vmul.f32 %v1973_v34, %v1959_v7 }
 0x629   :  { %v1546_v36 = vpop.xlane.xlu0 %1545 }
 0x62a   :  { %1980 = vrcp.f32 %v1546_v36  ;;  %1873 = vmatmul.mubr.msk.f32.vlgmr.msra.gmra.mxu0 %vm267_vm2, %v866_v35 }
 0x62b   :  { %1881 = vmatpush3.msra.mxu0 %v2357_v58  ;;  %1882 = vmatprep.mubr.msk.f32.mxu0 %vm2165_vm1, %v2161_v0  ;;  %v1975_v37 = vpop.eup %1974 }
 0x62c   :  { %1890 = vmatprep.subr.mxu0 %v2161_v0  ;;  %v1039_v39 = vmul.f32 %v1975_v37, %v1961_v10  ;;  %v1977_v40 = vpop.eup %1976 }
 0x62d   :  { %v1204_v41 = vmul.f32 %v1977_v40, %v1963_v13  ;;  %v1378_v43 = vpop.permute.xlu0 %1377 }
 0x62e   :  { %1883 = vmatmul.mubr.msk.f32.vlgmr.msra.gmra.mxu0 %vm267_vm2, %v1039_v39 }
 0x62f   :  { %1891 = vmatpush3.msra.mxu0 %v1206_v29  ;;  %1892 = vmatprep.mubr.msk.f32.mxu0 %vm2165_vm1, %v2161_v0  ;;  %v1979_v42 = vpop.eup %1978 }
 0x630   :  { %1900 = vmatprep.subr.mxu0 %v2161_v0  ;;  %v1376_v44 = vmul.f32 %v1979_v42, %v1965_v16 }
 0x632   :  { %1893 = vmatmul.mubr.msk.f32.vlgmr.msra.gmra.mxu0 %vm267_vm2, %v1204_v41 }
 0x633   :  { %1901 = vmatpush3.msra.mxu0 %v1378_v43  ;;  %1902 = vmatprep.mubr.msk.f32.mxu0 %vm2165_vm1, %v2161_v0 }
 0x634   :  { %1910 = vmatprep.subr.mxu0 %v2161_v0 }
 0x636   :  { %1903 = vmatmul.mubr.msk.f32.vlgmr.msra.gmra.mxu0 %vm267_vm2, %v1376_v44 }
 0x637   :  { %v1981_v45 = vpop.eup %1980  ;;  %1911 = vmatpush3.msra.mxu0 %v1550_v46  ;;  %1912 = vmatprep.mubr.msk.f32.mxu0 %vm2165_vm1, %v2161_v0 }
 0x638   :  { %v1548_v47 = vmul.f32 %v1981_v45, %v1967_v18 }
 0x63a   :  { %1913 = vmatmul.mubr.msk.f32.vlgmr.msra.gmra.mxu0 %vm267_vm2, %v1548_v47 }
 0x6b5   :  { %v593_v48 = vpop.f32.mrf.mxu0 }
 0x6b6   :  { %598 = vrot.lane.b32.xlu0 %v593_v48, %s2158_s14 }
 0x6b7   :  { %v1854_v49 = vpop.f32.mrf.mxu0 }
 0x6b9   :  { %v766_v50 = vpop.f32.mrf.mxu0 }
 0x6ba   :  { %771 = vrot.lane.b32.xlu1 %v766_v50, %s2154_s28 }
 0x6bb   :  { %v1864_v51 = vpop.f32.mrf.mxu0 }
 0x6ea   :  { %v939_v52 = vpop.f32.mrf.mxu0 }
 0x6eb   :  { %944 = vrot.lane.b32.xlu1 %v939_v52, %s2172_s12 }
 0x6ec   :  { %v1874_v53 = vpop.f32.mrf.mxu0 }
 0x6ee   :  { %v1109_v54 = vpop.f32.mrf.mxu0 }
 0x6ef   :  { %1113 = vst.msk [vmem:[#allocation2 + $0x8] sm:$0xff] %vm267_vm2, %v1109_v54 }
 0x6f0   :  { %v1884_v0 = vpop.f32.mrf.mxu0 }
 0x6f2   :  { %v1277_v56 = vpop.f32.mrf.mxu0 }
 0x6f3   :  { %1282 = vrot.lane.b32.xlu0 %v1277_v56, %s2158_s14 }
 0x6f4   :  { %v1894_v60 = vpop.f32.mrf.mxu0 }
 0x6f6   :  { %v1449_v61 = vpop.f32.mrf.mxu0 }
 0x6f7   :  { %1454 = vrot.lane.b32.xlu0 %v1449_v61, %s2154_s28  ;;  %s2173_s28 = smov [#allocation13]  }
 0x6f8   :  { %v1904_v62 = vpop.f32.mrf.mxu0  ;;  %s1736_s15 = sshll.u32 %s2173_s28, 4  ;;  %s1737_s15 = int_to_ptr.vmem [resolvable:$true] %s1736_s15 }
 0x6f9   :  { %s2082_s16 = scalar_lea.vmem %s1737_s15, 256  ;;  %p2087_p12 = scmp.lt.s32.totalorder %s1737_s15, %s1737_s15 }
 0x6fa   :  { %v1621_v63 = vpop.f32.mrf.mxu0  ;;  %p2083_p11 = scmp.ne.s32.totalorder %s1737_s15, %s2082_s16  ;;  %p2088_p13 = scmp.lt.s32.totalorder %s2082_s16, %s2082_s16 }
 0x6fb   :  { %243 = vrot.lane.b32.xlu0 %v2266_v26, %s2162_s2  ;;  %1626 = vrot.lane.b32.xlu1 %v1621_v63, %s2172_s12 }
 0x6fc   :  { %v1914_v1 = vpop.f32.mrf.mxu0  ;;  %p2089_p0 = por %p2088_p13, %p2087_p12 }
 0x6fe   :  { %p2090_p1 = pnand %p2089_p0, %p2083_p11 }
 0x6ff   :  { %251 = vrot.lane.b32.xlu0 %v2266_v26, %s2163_s4  ;;  %245 = vrot.lane.b32.xlu1 %v2357_v58, %s2162_s2 }
 0x703   :  { %253 = vrot.lane.b32.xlu1 %v2357_v58, %s2163_s4 }
 0x728   :  { %v599_v2 = vpop.permute.xlu0 %598 }
 0x729   :  { %602 = vst.msk [vmem:[#allocation2] sm:$0xff] %vm601_vm4, %v599_v2 }
 0x72c   :  { %v772_v3 = vpop.permute.xlu1 %771 }
 0x72d   :  { %775 = vst.msk [vmem:[#allocation2] sm:$0xff] %vm774_vm5, %v772_v3 }
 0x75d   :  { %v945_v4 = vpop.permute.xlu1 %944 }
 0x75e   :  { %948 = vst.msk [vmem:[#allocation2] sm:$0xff] %vm947_vm6, %v945_v4 }
 0x765   :  { %v1630_v5 = vld [vmem:[#allocation2] sm:$0xff]  ;;  %v1283_v6 = vpop.permute.xlu0 %1282 }
 0x766   :  { %1923 = vmatprep.mubr.msk.f32.mxu1 %vm103_vm0, %v1630_v5  ;;  %1285 = vst.msk [vmem:[#allocation2 + $0x8] sm:$0xff] %vm601_vm4, %v1283_v6 }
 0x769   :  { %v1455_v26 = vpop.permute.xlu0 %1454 }
 0x76a   :  { %1457 = vst.msk [vmem:[#allocation2 + $0x8] sm:$0xff] %vm774_vm5, %v1455_v26 }
 0x76d   :  { %v244_v7 = vpop.permute.xlu0 %243  ;;  %v1627_v8 = vpop.permute.xlu1 %1626 }
 0x76e   :  { %249 = vst.msk [vmem:[#allocation13] sm:$0xff] %vm103_vm0, %v244_v7 }
 0x76f   :  { %1629 = vst.msk [vmem:[#allocation2 + $0x8] sm:$0xff] %vm947_vm6, %v1627_v8 }
 0x771   :  { %v252_v58 = vpop.permute.xlu0 %251  ;;  %v246_v9 = vpop.permute.xlu1 %245 }
 0x772   :  { %257 = vst.msk [vmem:[#allocation15] sm:$0xff] %vm103_vm0, %v252_v58  ;;  %250 = vst.msk [vmem:[#allocation13 + $0x8] sm:$0xff] %vm103_vm0, %v246_v9 }
 0x775   :  { %v254_v10 = vpop.permute.xlu1 %253 }
 0x776   :  { %v1631_v11 = vld [vmem:[#allocation2 + $0x8] sm:$0xff]  ;;  %258 = vst.msk [vmem:[#allocation15 + $0x8] sm:$0xff] %vm103_vm0, %v254_v10 }
 0x777   :  { %1924 = vmatmul.mubr.msk.f32.vlgmr.msra.gmra.mxu1 %vm103_vm0, %v1631_v11 }
 0x778   :  { %2093 = shalt.err (!%p2090_p1)
}
 0x779   :  { %1742 = dma.vmem_to_hbm [thread:$0]  %s1737_s15, 256, %s2442_s6, [#allocation14], %s2157_s13, %s2157_s13, %s2158_s14  }
 0x77a   :  { %s2174_s18 = smov [#allocation15]  }
 0x77b   :  { %s1748_s19 = sshll.u32 %s2174_s18, 4  ;;  %s1749_s19 = int_to_ptr.vmem [resolvable:$true] %s1748_s19 }
 0x77c   :  { %s2102_s20 = scalar_lea.vmem %s1749_s19, 256  ;;  %p2107_p3 = scmp.lt.s32.totalorder %s1749_s19, %s1749_s19 }
 0x77d   :  { %p2103_p2 = scmp.ne.s32.totalorder %s1749_s19, %s2102_s20  ;;  %p2108_p4 = scmp.lt.s32.totalorder %s2102_s20, %s2102_s20 }
 0x77f   :  { %p2109_p5 = por %p2108_p4, %p2107_p3 }
 0x781   :  { %p2110_p6 = pnand %p2109_p5, %p2103_p2 }
 0x783   :  { %2113 = shalt.err (!%p2110_p6)
}
 0x784   :  { %1754 = dma.vmem_to_hbm [thread:$0]  %s1749_s19, 256, %s2443_s7, [#allocation14], %s2157_s13, %s2157_s13, %s2158_s14  }
 0x785   :  { %s2175_s22 = smov [#allocation12]  }
 0x786   :  { %s1724_s23 = sshll.u32 %s2175_s22, 4  ;;  %s1725_s23 = int_to_ptr.vmem [resolvable:$true] %s1724_s23 }
 0x787   :  { %s2122_s6 = scalar_lea.vmem %s1725_s23, 256  ;;  %p2127_p8 = scmp.lt.s32.totalorder %s1725_s23, %s1725_s23 }
 0x788   :  { %p2123_p7 = scmp.ne.s32.totalorder %s1725_s23, %s2122_s6  ;;  %p2128_p9 = scmp.lt.s32.totalorder %s2122_s6, %s2122_s6 }
 0x78a   :  { %p2129_p10 = por %p2128_p9, %p2127_p8 }
 0x78c   :  { %p2130_p11 = pnand %p2129_p10, %p2123_p7 }
 0x837   :  { %v1925_v12 = vpop.f32.mrf.mxu1 }
 0x838   :  { %1718 = vst.msk [vmem:[#allocation12 + $0x8] sm:$0xff] %vm103_vm0, %v1925_v12 }
 0x839   :  { %v1708_v13 = vpop.f32.mrf.mxu1 }
 0x83a   :  { %1717 = vst.msk [vmem:[#allocation12] sm:$0xff] %vm103_vm0, %v1708_v13 }
 0x83b   :  { %2133 = shalt.err (!%p2130_p11)
}
 0x83c   :  { %1730 = dma.vmem_to_hbm [thread:$0]  %s1725_s23, 256, %s2441_s5, [#allocation5], %s2157_s13, %s2157_s13, %s2158_s14  }
 0x83d   :  { %2148 = dma.done.wait [#allocation5], 256  }
 0x83e   :  { %2149 = vsyncadd [#allocation5], 4294967040 }
 0x83f   :  { %2150 = dma.done.wait [#allocation14], 512  }
 0x840   :  { %2151 = vsyncadd [#allocation14], 4294966784 }
 0x841   :  { %1764 = vsyncpa [#allocation4], 1 }
 0x842   :  { %1765 = vsyncpa [#allocation7], 1 }
 0x843   :  { %1766 = vsyncpa [#allocation10], 1 }
 0x844   :  { %1767 = vsyncpa [#allocation5], 1 }
 0x845   :  { %1768 = vsyncpa [#allocation14], 1 }

</bundles_post_ra>
